<compile_context>
chip_gen: v7x
topology: tpu7x:2x2x1
jax: 0.10.0
libtpu: 0.0.40
codegen_flags: <defaults>
</compile_context>

<pallas_src>
import jax
import jax.numpy as jnp
from jax.experimental import pallas as pl
from jax.experimental.pallas import tpu as pltpu


def _round_up(x, m):
    return ((x + m - 1) // m) * m


def _make_fused_kernel(theta_dim, k_theta, n_extra, leaky, has_hidden):
    """Kernel computing the whole autoregressive MLP stack for one batch tile."""

    # LeakyReLU: max(h, a*h) == where(h>0, h, a*h) for 0<=a<=1 (one mul + one max).
    if 0.0 <= leaky <= 1.0:
        def lrelu(h):
            return jnp.maximum(h, leaky * h)
    else:
        def lrelu(h):
            return jnp.where(h > 0, h, leaky * h)

    def kernel(*refs):
        if has_hidden:
            (inp_ref, w1_ref, b1_ref, wh_ref, bh_ref, wo_ref, bo_ref,
             out_ref, buf) = refs
        else:
            (inp_ref, w1_ref, b1_ref, wo_ref, bo_ref, out_ref, buf) = refs
            wh_ref = bh_ref = None

        tb = buf.shape[0]
        # Scratch persists across grid steps: zero the theta block so stale values
        # (incl. NaNs) can never leak into the zero-weight rows of the matmul.
        buf[:, :k_theta] = jnp.zeros((tb, k_theta), jnp.float32)
        # [taus | X | pad] slab, loaded once per tile; thetas are filled per step.
        buf[:, k_theta:] = inp_ref[...]

        for i in range(theta_dim):
            # First layer of sub-net i as ONE MXU matmul over the full buffer.
            # Rows for theta_j (j >= i) and tau_j (j != i) were zeroed at init, so
            # this equals Linear([tau_i, theta_<i, X]) exactly.
            h = jnp.dot(buf[...], w1_ref[i], preferred_element_type=jnp.float32)
            h = lrelu(h + b1_ref[i])

            for k in range(n_extra):
                h = jnp.dot(h, wh_ref[i, k], preferred_element_type=jnp.float32)
                h = lrelu(h + bh_ref[i, k])

            # Output layer (z_dim == 1): elementwise mul + lane reduction (XLU),
            # avoiding an N=1 MXU matmul.
            o = jnp.sum(h * wo_ref[i], axis=1, keepdims=True) + bo_ref[i]
            buf[:, i:i + 1] = o          # autoregressive carry stays on-chip

        # Single lane-dense output store per tile (no per-i masked stores).
        out_ref[...] = buf[:, :theta_dim].astype(out_ref.dtype)

    return kernel


def autonet_forward(X, params, taus=None, *, leaky=0.1, key=None, block_b=512):
    """Fused forward: theta_i = MLP_i([tau_i, theta_<i, X]); returns (B, theta_dim)."""
    meta = params["meta"]
    theta_dim, x_dim = meta["theta_dim"], meta["x_dim"]
    k_theta, k_in, factor = meta["k_theta"], meta["k_in"], meta["factor"]
    has_hidden = params["wh"] is not None
    n_extra = params["wh"].shape[1] if has_hidden else 0

    B = X.shape[0]
    assert X.shape[1] == x_dim, (X.shape, x_dim)

    if taus is None:
        if key is None:
            raise ValueError("taus=None requires an explicit PRNG `key` "
                             "(PyTorch samples taus from its numpy RandomState).")
        taus = jax.random.uniform(key, (B, theta_dim), jnp.float32)

    X = X.astype(jnp.float32)
    taus = taus.astype(jnp.float32)

    # Combined [taus | X] input, zero-padded so the first-layer contraction dim is
    # 8-aligned and matches the kernel's buffer layout.
    d_in = k_in - k_theta
    inp = jnp.concatenate([taus, X], axis=1)
    if inp.shape[1] < d_in:
        inp = jnp.pad(inp, ((0, 0), (0, d_in - inp.shape[1])))

    # Batch tiling: 8-aligned sublane tiles; cap the tile so the (parallel) grid has
    # at least 2 steps so both v7x TensorCores get work (no effect on v5e/v6e).
    tb = _round_up(min(block_b, max(B, 1)), 8)
    tb = max(8, min(tb, _round_up(-(-_round_up(B, 8) // 2), 8)))
    Bp = _round_up(B, tb)
    if Bp != B:
        inp = jnp.pad(inp, ((0, Bp - B), (0, 0)))

    weight_args = [params["w1"], params["b1"]]
    if has_hidden:
        weight_args += [params["wh"], params["bh"]]
    weight_args += [params["wo"], params["bo"]]

    # Explicit VMEM budget (v5e scoped default is only 16 MiB): resident weights
    # (allow 2x in case they end up double-buffered) + pipelined tiles + activations.
    weight_bytes = sum(int(w.size) * w.dtype.itemsize for w in weight_args)
    tile_bytes = tb * 4 * (d_in + theta_dim + k_in + 8 * factor)
    vmem_limit = int(min(128 << 20,
                         max(32 << 20, 2 * weight_bytes + 2 * tile_bytes + (2 << 20))))

    kernel = _make_fused_kernel(theta_dim, k_theta, n_extra, leaky, has_hidden)

    def build(weight_mode):
        def resident(w):
            nd = w.ndim
            if weight_mode is None:
                return pl.BlockSpec(w.shape, lambda b, nd=nd: (0,) * nd)
            return pl.BlockSpec(w.shape, lambda b, nd=nd: (0,) * nd,
                                pipeline_mode=weight_mode)

        in_specs = ([pl.BlockSpec((tb, d_in), lambda b: (b, 0))]
                    + [resident(w) for w in weight_args])
        return pl.pallas_call(
            kernel,
            out_shape=jax.ShapeDtypeStruct((Bp, theta_dim), jnp.float32),
            grid=(Bp // tb,),
            in_specs=in_specs,
            out_specs=pl.BlockSpec((tb, theta_dim), lambda b: (b, 0)),
            scratch_shapes=[pltpu.VMEM((tb, k_in), jnp.float32)],
            compiler_params=pltpu.CompilerParams(
                dimension_semantics=("parallel",),
                vmem_limit_bytes=vmem_limit),
        )

    # Grid-invariant weights don't need double-buffering; keep them single-buffered
    # where supported (halves weight VMEM, matters on v7x's 64 MiB), else fall back.
    single = pl.Buffered(1) if hasattr(pl, "Buffered") else None
    if single is not None:
        try:
            out = build(single)(inp, *weight_args)
        except Exception:
            out = build(None)(inp, *weight_args)
    else:
        out = build(None)(inp, *weight_args)

    return out[:B]


def init_autonet_params(key, x_dim=2, theta_dim=2, factor=64, n_layers=2):
    """PyTorch nn.Linear-style init (U(-1/sqrt(fan_in), +1/sqrt(fan_in))), packed
    ONCE for the fused kernel: the first layers of all sub-nets are stacked into a
    (theta_dim, k_in, factor) slab following the kernel's on-chip buffer layout
    [theta_0..theta_{T-1} | pad | tau_0..tau_{T-1} | X | pad] with the autoregressive
    mask baked in as zero rows; hidden/output layers are stacked along theta_dim."""

    def linear(k, fan_in, fan_out):
        kw, kb = jax.random.split(k)
        bound = 1.0 / float(fan_in) ** 0.5
        w = jax.random.uniform(kw, (fan_in, fan_out), jnp.float32, -bound, bound)
        b = jax.random.uniform(kb, (fan_out,), jnp.float32, -bound, bound)
        return w, b

    n_extra = n_layers - 1
    k_theta = _round_up(max(theta_dim, 1), 8)
    k_in = _round_up(k_theta + theta_dim + x_dim, 8)

    w1s, b1s, whs, bhs, wos, bos = [], [], [], [], [], []
    for i in range(theta_dim):
        d_in = 1 + i + x_dim      # PyTorch sub-net i input: [tau_i, theta_<i, X]
        keys = jax.random.split(jax.random.fold_in(key, i), n_layers + 1)

        w1, b1 = linear(keys[0], d_in, factor)
        slab = jnp.zeros((k_in, factor), jnp.float32)
        if i > 0:
            slab = slab.at[:i, :].set(w1[1:1 + i, :])                    # theta_<i rows
        slab = slab.at[k_theta + i, :].set(w1[0, :])                     # tau_i row
        slab = slab.at[k_theta + theta_dim:k_theta + theta_dim + x_dim, :].set(
            w1[1 + i:, :])                                               # X rows
        w1s.append(slab)
        b1s.append(b1[None, :])

        wh_i, bh_i = [], []
        for l in range(n_extra):
            w, b = linear(keys[1 + l], factor, factor)
            wh_i.append(w)
            bh_i.append(b[None, :])
        if n_extra:
            whs.append(jnp.stack(wh_i))                # (n_extra, F, F)
            bhs.append(jnp.stack(bh_i))                # (n_extra, 1, F)

        w_out, b_out = linear(keys[n_layers], factor, 1)
        wos.append(w_out.T)                            # (1, F)
        bos.append(b_out.reshape(1, 1))                # (1, 1)

    return dict(
        w1=jnp.stack(w1s),                             # (theta_dim, k_in, F)
        b1=jnp.stack(b1s),                             # (theta_dim, 1, F)
        wh=jnp.stack(whs) if n_extra else None,        # (theta_dim, n_extra, F, F)
        bh=jnp.stack(bhs) if n_extra else None,        # (theta_dim, n_extra, 1, F)
        wo=jnp.stack(wos),                             # (theta_dim, 1, F)
        bo=jnp.stack(bos),                             # (theta_dim, 1, 1)
        meta=dict(theta_dim=theta_dim, x_dim=x_dim, factor=factor,
                  n_layers=n_layers, k_theta=k_theta, k_in=k_in),
    )


def _reference_forward(X, taus, params, leaky=0.1):
    """Pure-JAX mirror of the PyTorch forward (per-step concat + full Linear),
    reconstructed from the packed weights."""
    meta = params["meta"]
    theta_dim, x_dim, k_theta = meta["theta_dim"], meta["x_dim"], meta["k_theta"]
    n_extra = params["wh"].shape[1] if params["wh"] is not None else 0

    def lrelu(h):
        return jnp.where(h > 0, h, leaky * h)

    thetas = []
    for i in range(theta_dim):
        w1_tau = params["w1"][i, k_theta + i:k_theta + i + 1, :]
        w1_th = params["w1"][i, :i, :]
        w1_x = params["w1"][i, k_theta + theta_dim:k_theta + theta_dim + x_dim, :]
        w1_full = jnp.concatenate([w1_tau, w1_th, w1_x], axis=0)   # (1+i+x_dim, F)
        inp = jnp.concatenate([taus[:, i:i + 1]] + thetas + [X], axis=1)
        h = lrelu(inp @ w1_full + params["b1"][i])
        for k in range(n_extra):
            h = lrelu(h @ params["wh"][i, k] + params["bh"][i, k])
        o = h @ params["wo"][i].T + params["bo"][i, 0]
        thetas.append(o)
    return jnp.concatenate(thetas, axis=1)


if __name__ == "__main__":
    # B=16 on purpose: with the v7x tile cap this yields a 2-step grid, exercising
    # the per-tile scratch re-initialization path against the reference.
    B, x_dim, theta_dim, factor, n_layers, leaky = 16, 2, 2, 64, 2, 0.1

    key = jax.random.PRNGKey(0)
    kx, ktau, kparams = jax.random.split(key, 3)

    X = jax.random.normal(kx, (B, x_dim), jnp.float32)
    taus = jax.random.uniform(ktau, (B, theta_dim), jnp.float32)
    params = init_autonet_params(kparams, x_dim, theta_dim, factor, n_layers)

    out = autonet_forward(X, params, taus, leaky=leaky)
    out = jax.block_until_ready(out)

    ref = _reference_forward(X, taus, params, leaky)
    assert out.shape == (B, theta_dim), out.shape
    assert jnp.allclose(out, ref, atol=2e-5, rtol=2e-5), (out, ref)

    print("KERNEL_OK")
</pallas_src>

<mosaic_0001>
module attributes {stable_mosaic.version = 11 : i64} {
  func.func @kernel(%arg0: i32, %arg1: memref<8x8xf32, #tpu.memory_space<vmem>>, %arg2: memref<2x16x64xf32, #tpu.memory_space<vmem>>, %arg3: memref<2x1x64xf32, #tpu.memory_space<vmem>>, %arg4: memref<2x1x64x64xf32, #tpu.memory_space<vmem>>, %arg5: memref<2x1x1x64xf32, #tpu.memory_space<vmem>>, %arg6: memref<2x1x64xf32, #tpu.memory_space<vmem>>, %arg7: memref<2x1x1xf32, #tpu.memory_space<vmem>>, %arg8: memref<8x2xf32, #tpu.memory_space<vmem>>, %arg9: memref<8x16xf32, #tpu.memory_space<vmem>>) attributes {dimension_semantics = [#tpu.dimension_semantics<parallel>], iteration_bounds = array<i64: 2>, scalar_prefetch = 0 : i64, scratch_operands = 1 : i64, tpu.core_type = #tpu.core_type<tc>, window_params = [{transform_indices = @transform_0, window_bounds = array<i64: 8, 8>}, {pipeline_mode = #tpu.pipeline_mode<synchronous>, transform_indices = @transform_1, window_bounds = array<i64: 2, 16, 64>}, {pipeline_mode = #tpu.pipeline_mode<synchronous>, transform_indices = @transform_2, window_bounds = array<i64: 2, 1, 64>}, {pipeline_mode = #tpu.pipeline_mode<synchronous>, transform_indices = @transform_3, window_bounds = array<i64: 2, 1, 64, 64>}, {pipeline_mode = #tpu.pipeline_mode<synchronous>, transform_indices = @transform_4, window_bounds = array<i64: 2, 1, 1, 64>}, {pipeline_mode = #tpu.pipeline_mode<synchronous>, transform_indices = @transform_5, window_bounds = array<i64: 2, 1, 64>}, {pipeline_mode = #tpu.pipeline_mode<synchronous>, transform_indices = @transform_6, window_bounds = array<i64: 2, 1, 1>}, {transform_indices = @transform_7, window_bounds = array<i64: 8, 2>}]} {
    %cst = arith.constant 0.000000e+00 : f32
    %0 = vector.broadcast %cst : f32 to vector<8x8xf32>
    %c0 = arith.constant 0 : index
    %c0_0 = arith.constant 0 : index
    %1 = vector.load %arg9[%c0, %c0_0] : memref<8x16xf32, #tpu.memory_space<vmem>>, vector<8x8xf32>
    tpu.vector_store %arg9[%c0, %c0_0], %0 {strides = array<i32>} : memref<8x16xf32, #tpu.memory_space<vmem>>, vector<8x8xf32>,
    %c0_1 = arith.constant 0 : index
    %c0_2 = arith.constant 0 : index
    %2 = vector.load %arg1[%c0_1, %c0_2] : memref<8x8xf32, #tpu.memory_space<vmem>>, vector<8x8xf32>
    %c0_3 = arith.constant 0 : index
    %c8 = arith.constant 8 : index
    %3 = vector.load %arg9[%c0_3, %c8] : memref<8x16xf32, #tpu.memory_space<vmem>>, vector<8x8xf32>
    tpu.vector_store %arg9[%c0_3, %c8], %2 {strides = array<i32>} : memref<8x16xf32, #tpu.memory_space<vmem>>, vector<8x8xf32>,
    %c0_4 = arith.constant 0 : index
    %c0_5 = arith.constant 0 : index
    %4 = vector.load %arg9[%c0_4, %c0_5] : memref<8x16xf32, #tpu.memory_space<vmem>>, vector<8x16xf32>
    %c0_6 = arith.constant 0 : index
    %c0_7 = arith.constant 0 : index
    %c0_8 = arith.constant 0 : index
    %5 = vector.load %arg2[%c0_6, %c0_7, %c0_8] : memref<2x16x64xf32, #tpu.memory_space<vmem>>, vector<1x16x64xf32>
    %6 = vector.shape_cast %5 : vector<1x16x64xf32> to vector<16x64xf32>
    %cst_9 = arith.constant dense<0.000000e+00> : vector<8x64xf32>
    %7 = tpu.matmul %4, %6, %cst_9 {dimension_numbers = #tpu.dot_dimension_numbers<[1], [0], [0], [1], [0, 0, 1, 1], [], []>} : vector<8x16xf32>, vector<16x64xf32>, vector<8x64xf32> -> vector<8x64xf32>
    %c0_10 = arith.constant 0 : index
    %c0_11 = arith.constant 0 : index
    %c0_12 = arith.constant 0 : index
    %8 = vector.load %arg3[%c0_10, %c0_11, %c0_12] : memref<2x1x64xf32, #tpu.memory_space<vmem>>, vector<1x1x64xf32>
    %9 = vector.shape_cast %8 : vector<1x1x64xf32> to vector<1x64xf32>
    %10 = vector.broadcast %9 : vector<1x64xf32> to vector<8x64xf32>
    %11 = arith.addf %7, %10 : vector<8x64xf32>
    %cst_13 = arith.constant 1.000000e-01 : f32
    %12 = vector.broadcast %cst_13 : f32 to vector<8x64xf32>
    %13 = arith.mulf %12, %11 : vector<8x64xf32>
    %14 = arith.maximumf %11, %13 : vector<8x64xf32>
    %c0_14 = arith.constant 0 : index
    %c0_15 = arith.constant 0 : index
    %c0_16 = arith.constant 0 : index
    %c0_17 = arith.constant 0 : index
    %15 = vector.load %arg4[%c0_14, %c0_15, %c0_16, %c0_17] : memref<2x1x64x64xf32, #tpu.memory_space<vmem>>, vector<1x1x64x64xf32>
    %16 = vector.shape_cast %15 : vector<1x1x64x64xf32> to vector<64x64xf32>
    %cst_18 = arith.constant dense<0.000000e+00> : vector<8x64xf32>
    %17 = tpu.matmul %14, %16, %cst_18 {dimension_numbers = #tpu.dot_dimension_numbers<[1], [0], [0], [1], [0, 0, 1, 1], [], []>} : vector<8x64xf32>, vector<64x64xf32>, vector<8x64xf32> -> vector<8x64xf32>
    %c0_19 = arith.constant 0 : index
    %c0_20 = arith.constant 0 : index
    %c0_21 = arith.constant 0 : index
    %c0_22 = arith.constant 0 : index
    %18 = vector.load %arg5[%c0_19, %c0_20, %c0_21, %c0_22] : memref<2x1x1x64xf32, #tpu.memory_space<vmem>>, vector<1x1x1x64xf32>
    %19 = vector.shape_cast %18 : vector<1x1x1x64xf32> to vector<1x64xf32>
    %20 = vector.broadcast %19 : vector<1x64xf32> to vector<8x64xf32>
    %21 = arith.addf %17, %20 : vector<8x64xf32>
    %cst_23 = arith.constant 1.000000e-01 : f32
    %22 = vector.broadcast %cst_23 : f32 to vector<8x64xf32>
    %23 = arith.mulf %22, %21 : vector<8x64xf32>
    %24 = arith.maximumf %21, %23 : vector<8x64xf32>
    %c0_24 = arith.constant 0 : index
    %c0_25 = arith.constant 0 : index
    %c0_26 = arith.constant 0 : index
    %25 = vector.load %arg6[%c0_24, %c0_25, %c0_26] : memref<2x1x64xf32, #tpu.memory_space<vmem>>, vector<1x1x64xf32>
    %26 = vector.shape_cast %25 : vector<1x1x64xf32> to vector<1x64xf32>
    %27 = vector.broadcast %26 : vector<1x64xf32> to vector<8x64xf32>
    %28 = arith.mulf %24, %27 : vector<8x64xf32>
    %cst_27 = arith.constant dense<0.000000e+00> : vector<8xf32>
    %29 = vector.multi_reduction <add>, %28, %cst_27 [1] : vector<8x64xf32> to vector<8xf32>
    %30 = vector.shape_cast %29 : vector<8xf32> to vector<8x1xf32>
    %c0_28 = arith.constant 0 : index
    %c0_29 = arith.constant 0 : index
    %c0_30 = arith.constant 0 : index
    %31 = vector.load %arg7[%c0_28, %c0_29, %c0_30] : memref<2x1x1xf32, #tpu.memory_space<vmem>>, vector<1x1x1xf32>
    %32 = vector.shape_cast %31 : vector<1x1x1xf32> to vector<1x1xf32>
    %33 = vector.broadcast %32 : vector<1x1xf32> to vector<8x1xf32>
    %34 = arith.addf %30, %33 : vector<8x1xf32>
    %c0_31 = arith.constant 0 : index
    %c0_32 = arith.constant 0 : index
    %35 = vector.load %arg9[%c0_31, %c0_32] : memref<8x16xf32, #tpu.memory_space<vmem>>, vector<8x1xf32>
    tpu.vector_store %arg9[%c0_31, %c0_32], %34 {strides = array<i32>} : memref<8x16xf32, #tpu.memory_space<vmem>>, vector<8x1xf32>,
    %c0_33 = arith.constant 0 : index
    %c0_34 = arith.constant 0 : index
    %36 = vector.load %arg9[%c0_33, %c0_34] : memref<8x16xf32, #tpu.memory_space<vmem>>, vector<8x16xf32>
    %c1 = arith.constant 1 : index
    %c0_35 = arith.constant 0 : index
    %c0_36 = arith.constant 0 : index
    %37 = vector.load %arg2[%c1, %c0_35, %c0_36] : memref<2x16x64xf32, #tpu.memory_space<vmem>>, vector<1x16x64xf32>
    %38 = vector.shape_cast %37 : vector<1x16x64xf32> to vector<16x64xf32>
    %cst_37 = arith.constant dense<0.000000e+00> : vector<8x64xf32>
    %39 = tpu.matmul %36, %38, %cst_37 {dimension_numbers = #tpu.dot_dimension_numbers<[1], [0], [0], [1], [0, 0, 1, 1], [], []>} : vector<8x16xf32>, vector<16x64xf32>, vector<8x64xf32> -> vector<8x64xf32>
    %c1_38 = arith.constant 1 : index
    %c0_39 = arith.constant 0 : index
    %c0_40 = arith.constant 0 : index
    %40 = vector.load %arg3[%c1_38, %c0_39, %c0_40] : memref<2x1x64xf32, #tpu.memory_space<vmem>>, vector<1x1x64xf32>
    %41 = vector.shape_cast %40 : vector<1x1x64xf32> to vector<1x64xf32>
    %42 = vector.broadcast %41 : vector<1x64xf32> to vector<8x64xf32>
    %43 = arith.addf %39, %42 : vector<8x64xf32>
    %cst_41 = arith.constant 1.000000e-01 : f32
    %44 = vector.broadcast %cst_41 : f32 to vector<8x64xf32>
    %45 = arith.mulf %44, %43 : vector<8x64xf32>
    %46 = arith.maximumf %43, %45 : vector<8x64xf32>
    %c1_42 = arith.constant 1 : index
    %c0_43 = arith.constant 0 : index
    %c0_44 = arith.constant 0 : index
    %c0_45 = arith.constant 0 : index
    %47 = vector.load %arg4[%c1_42, %c0_43, %c0_44, %c0_45] : memref<2x1x64x64xf32, #tpu.memory_space<vmem>>, vector<1x1x64x64xf32>
    %48 = vector.shape_cast %47 : vector<1x1x64x64xf32> to vector<64x64xf32>
    %cst_46 = arith.constant dense<0.000000e+00> : vector<8x64xf32>
    %49 = tpu.matmul %46, %48, %cst_46 {dimension_numbers = #tpu.dot_dimension_numbers<[1], [0], [0], [1], [0, 0, 1, 1], [], []>} : vector<8x64xf32>, vector<64x64xf32>, vector<8x64xf32> -> vector<8x64xf32>
    %c1_47 = arith.constant 1 : index
    %c0_48 = arith.constant 0 : index
    %c0_49 = arith.constant 0 : index
    %c0_50 = arith.constant 0 : index
    %50 = vector.load %arg5[%c1_47, %c0_48, %c0_49, %c0_50] : memref<2x1x1x64xf32, #tpu.memory_space<vmem>>, vector<1x1x1x64xf32>
    %51 = vector.shape_cast %50 : vector<1x1x1x64xf32> to vector<1x64xf32>
    %52 = vector.broadcast %51 : vector<1x64xf32> to vector<8x64xf32>
    %53 = arith.addf %49, %52 : vector<8x64xf32>
    %cst_51 = arith.constant 1.000000e-01 : f32
    %54 = vector.broadcast %cst_51 : f32 to vector<8x64xf32>
    %55 = arith.mulf %54, %53 : vector<8x64xf32>
    %56 = arith.maximumf %53, %55 : vector<8x64xf32>
    %c1_52 = arith.constant 1 : index
    %c0_53 = arith.constant 0 : index
    %c0_54 = arith.constant 0 : index
    %57 = vector.load %arg6[%c1_52, %c0_53, %c0_54] : memref<2x1x64xf32, #tpu.memory_space<vmem>>, vector<1x1x64xf32>
    %58 = vector.shape_cast %57 : vector<1x1x64xf32> to vector<1x64xf32>
    %59 = vector.broadcast %58 : vector<1x64xf32> to vector<8x64xf32>
    %60 = arith.mulf %56, %59 : vector<8x64xf32>
    %cst_55 = arith.constant dense<0.000000e+00> : vector<8xf32>
    %61 = vector.multi_reduction <add>, %60, %cst_55 [1] : vector<8x64xf32> to vector<8xf32>
    %62 = vector.shape_cast %61 : vector<8xf32> to vector<8x1xf32>
    %c1_56 = arith.constant 1 : index
    %c0_57 = arith.constant 0 : index
    %c0_58 = arith.constant 0 : index
    %63 = vector.load %arg7[%c1_56, %c0_57, %c0_58] : memref<2x1x1xf32, #tpu.memory_space<vmem>>, vector<1x1x1xf32>
    %64 = vector.shape_cast %63 : vector<1x1x1xf32> to vector<1x1xf32>
    %65 = vector.broadcast %64 : vector<1x1xf32> to vector<8x1xf32>
    %66 = arith.addf %62, %65 : vector<8x1xf32>
    %c0_59 = arith.constant 0 : index
    %c1_60 = arith.constant 1 : index
    %67 = vector.load %arg9[%c0_59, %c1_60] : memref<8x16xf32, #tpu.memory_space<vmem>>, vector<8x1xf32>
    tpu.vector_store %arg9[%c0_59, %c1_60], %66 {strides = array<i32>} : memref<8x16xf32, #tpu.memory_space<vmem>>, vector<8x1xf32>,
    %c0_61 = arith.constant 0 : index
    %c0_62 = arith.constant 0 : index
    %68 = vector.load %arg9[%c0_61, %c0_62] : memref<8x16xf32, #tpu.memory_space<vmem>>, vector<8x2xf32>
    %c0_63 = arith.constant 0 : index
    %c0_64 = arith.constant 0 : index
    %69 = vector.load %arg8[%c0_63, %c0_64] : memref<8x2xf32, #tpu.memory_space<vmem>>, vector<8x2xf32>
    tpu.vector_store %arg8[%c0_63, %c0_64], %68 {strides = array<i32>} : memref<8x2xf32, #tpu.memory_space<vmem>>, vector<8x2xf32>,
    return
  }
  func.func @transform_0(%arg0: i32) -> (i32, i32) {
    %c0_i32 = arith.constant 0 : i32
    %c0_i32_0 = arith.constant 0 : i32
    return %arg0, %c0_i32 : i32, i32
  }
  func.func @transform_1(%arg0: i32) -> (i32, i32, i32) {
    %c0_i32 = arith.constant 0 : i32
    %c0_i32_0 = arith.constant 0 : i32
    %c0_i32_1 = arith.constant 0 : i32
    %c0_i32_2 = arith.constant 0 : i32
    return %c0_i32, %c0_i32_0, %c0_i32_1 : i32, i32, i32
  }
  func.func @transform_2(%arg0: i32) -> (i32, i32, i32) {
    %c0_i32 = arith.constant 0 : i32
    %c0_i32_0 = arith.constant 0 : i32
    %c0_i32_1 = arith.constant 0 : i32
    %c0_i32_2 = arith.constant 0 : i32
    return %c0_i32, %c0_i32_0, %c0_i32_1 : i32, i32, i32
  }
  func.func @transform_3(%arg0: i32) -> (i32, i32, i32, i32) {
    %c0_i32 = arith.constant 0 : i32
    %c0_i32_0 = arith.constant 0 : i32
    %c0_i32_1 = arith.constant 0 : i32
    %c0_i32_2 = arith.constant 0 : i32
    %c0_i32_3 = arith.constant 0 : i32
    return %c0_i32, %c0_i32_0, %c0_i32_1, %c0_i32_2 : i32, i32, i32, i32
  }
  func.func @transform_4(%arg0: i32) -> (i32, i32, i32, i32) {
    %c0_i32 = arith.constant 0 : i32
    %c0_i32_0 = arith.constant 0 : i32
    %c0_i32_1 = arith.constant 0 : i32
    %c0_i32_2 = arith.constant 0 : i32
    %c0_i32_3 = arith.constant 0 : i32
    return %c0_i32, %c0_i32_0, %c0_i32_1, %c0_i32_2 : i32, i32, i32, i32
  }
  func.func @transform_5(%arg0: i32) -> (i32, i32, i32) {
    %c0_i32 = arith.constant 0 : i32
    %c0_i32_0 = arith.constant 0 : i32
    %c0_i32_1 = arith.constant 0 : i32
    %c0_i32_2 = arith.constant 0 : i32
    return %c0_i32, %c0_i32_0, %c0_i32_1 : i32, i32, i32
  }
  func.func @transform_6(%arg0: i32) -> (i32, i32, i32) {
    %c0_i32 = arith.constant 0 : i32
    %c0_i32_0 = arith.constant 0 : i32
    %c0_i32_1 = arith.constant 0 : i32
    %c0_i32_2 = arith.constant 0 : i32
    return %c0_i32, %c0_i32_0, %c0_i32_1 : i32, i32, i32
  }
  func.func @transform_7(%arg0: i32) -> (i32, i32) {
    %c0_i32 = arith.constant 0 : i32
    %c0_i32_0 = arith.constant 0 : i32
    return %arg0, %c0_i32 : i32, i32
  }
}

module attributes {stable_mosaic.version = 11 : i64} {
  func.func @kernel(%arg0: i32, %arg1: memref<8x8xf32, #tpu.memory_space<vmem>>, %arg2: memref<2x16x64xf32, #tpu.memory_space<vmem>>, %arg3: memref<2x1x64xf32, #tpu.memory_space<vmem>>, %arg4: memref<2x1x64x64xf32, #tpu.memory_space<vmem>>, %arg5: memref<2x1x1x64xf32, #tpu.memory_space<vmem>>, %arg6: memref<2x1x64xf32, #tpu.memory_space<vmem>>, %arg7: memref<2x1x1xf32, #tpu.memory_space<vmem>>, %arg8: memref<8x2xf32, #tpu.memory_space<vmem>>, %arg9: memref<8x16xf32, #tpu.memory_space<vmem>>) attributes {dimension_semantics = [#tpu.dimension_semantics<parallel>], iteration_bounds = array<i64: 2>, scalar_prefetch = 0 : i64, scratch_operands = 1 : i64, tpu.core_type = #tpu.core_type<tc>, window_params = [{transform_indices = @transform_0, window_bounds = array<i64: 8, 8>}, {pipeline_mode = #tpu.pipeline_mode<synchronous>, transform_indices = @transform_1, window_bounds = array<i64: 2, 16, 64>}, {pipeline_mode = #tpu.pipeline_mode<synchronous>, transform_indices = @transform_2, window_bounds = array<i64: 2, 1, 64>}, {pipeline_mode = #tpu.pipeline_mode<synchronous>, transform_indices = @transform_3, window_bounds = array<i64: 2, 1, 64, 64>}, {pipeline_mode = #tpu.pipeline_mode<synchronous>, transform_indices = @transform_4, window_bounds = array<i64: 2, 1, 1, 64>}, {pipeline_mode = #tpu.pipeline_mode<synchronous>, transform_indices = @transform_5, window_bounds = array<i64: 2, 1, 64>}, {pipeline_mode = #tpu.pipeline_mode<synchronous>, transform_indices = @transform_6, window_bounds = array<i64: 2, 1, 1>}, {transform_indices = @transform_7, window_bounds = array<i64: 8, 2>}]} {
    %cst = arith.constant 0.000000e+00 : f32
    %0 = vector.broadcast %cst : f32 to vector<8x8xf32>
    %c0 = arith.constant 0 : index
    %c0_0 = arith.constant 0 : index
    %1 = vector.load %arg9[%c0, %c0_0] : memref<8x16xf32, #tpu.memory_space<vmem>>, vector<8x8xf32>
    tpu.vector_store %arg9[%c0, %c0_0], %0 {strides = array<i32>} : memref<8x16xf32, #tpu.memory_space<vmem>>, vector<8x8xf32>,
    %c0_1 = arith.constant 0 : index
    %c0_2 = arith.constant 0 : index
    %2 = vector.load %arg1[%c0_1, %c0_2] : memref<8x8xf32, #tpu.memory_space<vmem>>, vector<8x8xf32>
    %c0_3 = arith.constant 0 : index
    %c8 = arith.constant 8 : index
    %3 = vector.load %arg9[%c0_3, %c8] : memref<8x16xf32, #tpu.memory_space<vmem>>, vector<8x8xf32>
    tpu.vector_store %arg9[%c0_3, %c8], %2 {strides = array<i32>} : memref<8x16xf32, #tpu.memory_space<vmem>>, vector<8x8xf32>,
    %c0_4 = arith.constant 0 : index
    %c0_5 = arith.constant 0 : index
    %4 = vector.load %arg9[%c0_4, %c0_5] : memref<8x16xf32, #tpu.memory_space<vmem>>, vector<8x16xf32>
    %c0_6 = arith.constant 0 : index
    %c0_7 = arith.constant 0 : index
    %c0_8 = arith.constant 0 : index
    %5 = vector.load %arg2[%c0_6, %c0_7, %c0_8] : memref<2x16x64xf32, #tpu.memory_space<vmem>>, vector<1x16x64xf32>
    %6 = vector.shape_cast %5 : vector<1x16x64xf32> to vector<16x64xf32>
    %cst_9 = arith.constant dense<0.000000e+00> : vector<8x64xf32>
    %7 = tpu.matmul %4, %6, %cst_9 {dimension_numbers = #tpu.dot_dimension_numbers<[1], [0], [0], [1], [0, 0, 1, 1], [], []>} : vector<8x16xf32>, vector<16x64xf32>, vector<8x64xf32> -> vector<8x64xf32>
    %c0_10 = arith.constant 0 : index
    %c0_11 = arith.constant 0 : index
    %c0_12 = arith.constant 0 : index
    %8 = vector.load %arg3[%c0_10, %c0_11, %c0_12] : memref<2x1x64xf32, #tpu.memory_space<vmem>>, vector<1x1x64xf32>
    %9 = vector.shape_cast %8 : vector<1x1x64xf32> to vector<1x64xf32>
    %10 = vector.broadcast %9 : vector<1x64xf32> to vector<8x64xf32>
    %11 = arith.addf %7, %10 : vector<8x64xf32>
    %cst_13 = arith.constant 1.000000e-01 : f32
    %12 = vector.broadcast %cst_13 : f32 to vector<8x64xf32>
    %13 = arith.mulf %12, %11 : vector<8x64xf32>
    %14 = arith.maximumf %11, %13 : vector<8x64xf32>
    %c0_14 = arith.constant 0 : index
    %c0_15 = arith.constant 0 : index
    %c0_16 = arith.constant 0 : index
    %c0_17 = arith.constant 0 : index
    %15 = vector.load %arg4[%c0_14, %c0_15, %c0_16, %c0_17] : memref<2x1x64x64xf32, #tpu.memory_space<vmem>>, vector<1x1x64x64xf32>
    %16 = vector.shape_cast %15 : vector<1x1x64x64xf32> to vector<64x64xf32>
    %cst_18 = arith.constant dense<0.000000e+00> : vector<8x64xf32>
    %17 = tpu.matmul %14, %16, %cst_18 {dimension_numbers = #tpu.dot_dimension_numbers<[1], [0], [0], [1], [0, 0, 1, 1], [], []>} : vector<8x64xf32>, vector<64x64xf32>, vector<8x64xf32> -> vector<8x64xf32>
    %c0_19 = arith.constant 0 : index
    %c0_20 = arith.constant 0 : index
    %c0_21 = arith.constant 0 : index
    %c0_22 = arith.constant 0 : index
    %18 = vector.load %arg5[%c0_19, %c0_20, %c0_21, %c0_22] : memref<2x1x1x64xf32, #tpu.memory_space<vmem>>, vector<1x1x1x64xf32>
    %19 = vector.shape_cast %18 : vector<1x1x1x64xf32> to vector<1x64xf32>
    %20 = vector.broadcast %19 : vector<1x64xf32> to vector<8x64xf32>
    %21 = arith.addf %17, %20 : vector<8x64xf32>
    %cst_23 = arith.constant 1.000000e-01 : f32
    %22 = vector.broadcast %cst_23 : f32 to vector<8x64xf32>
    %23 = arith.mulf %22, %21 : vector<8x64xf32>
    %24 = arith.maximumf %21, %23 : vector<8x64xf32>
    %c0_24 = arith.constant 0 : index
    %c0_25 = arith.constant 0 : index
    %c0_26 = arith.constant 0 : index
    %25 = vector.load %arg6[%c0_24, %c0_25, %c0_26] : memref<2x1x64xf32, #tpu.memory_space<vmem>>, vector<1x1x64xf32>
    %26 = vector.shape_cast %25 : vector<1x1x64xf32> to vector<1x64xf32>
    %27 = vector.broadcast %26 : vector<1x64xf32> to vector<8x64xf32>
    %28 = arith.mulf %24, %27 : vector<8x64xf32>
    %cst_27 = arith.constant dense<0.000000e+00> : vector<8xf32>
    %29 = vector.multi_reduction <add>, %28, %cst_27 [1] : vector<8x64xf32> to vector<8xf32>
    %30 = vector.shape_cast %29 : vector<8xf32> to vector<8x1xf32>
    %c0_28 = arith.constant 0 : index
    %c0_29 = arith.constant 0 : index
    %c0_30 = arith.constant 0 : index
    %31 = vector.load %arg7[%c0_28, %c0_29, %c0_30] : memref<2x1x1xf32, #tpu.memory_space<vmem>>, vector<1x1x1xf32>
    %32 = vector.shape_cast %31 : vector<1x1x1xf32> to vector<1x1xf32>
    %33 = vector.broadcast %32 : vector<1x1xf32> to vector<8x1xf32>
    %34 = arith.addf %30, %33 : vector<8x1xf32>
    %c0_31 = arith.constant 0 : index
    %c0_32 = arith.constant 0 : index
    %35 = vector.load %arg9[%c0_31, %c0_32] : memref<8x16xf32, #tpu.memory_space<vmem>>, vector<8x1xf32>
    tpu.vector_store %arg9[%c0_31, %c0_32], %34 {strides = array<i32>} : memref<8x16xf32, #tpu.memory_space<vmem>>, vector<8x1xf32>,
    %c0_33 = arith.constant 0 : index
    %c0_34 = arith.constant 0 : index
    %36 = vector.load %arg9[%c0_33, %c0_34] : memref<8x16xf32, #tpu.memory_space<vmem>>, vector<8x16xf32>
    %c1 = arith.constant 1 : index
    %c0_35 = arith.constant 0 : index
    %c0_36 = arith.constant 0 : index
    %37 = vector.load %arg2[%c1, %c0_35, %c0_36] : memref<2x16x64xf32, #tpu.memory_space<vmem>>, vector<1x16x64xf32>
    %38 = vector.shape_cast %37 : vector<1x16x64xf32> to vector<16x64xf32>
    %cst_37 = arith.constant dense<0.000000e+00> : vector<8x64xf32>
    %39 = tpu.matmul %36, %38, %cst_37 {dimension_numbers = #tpu.dot_dimension_numbers<[1], [0], [0], [1], [0, 0, 1, 1], [], []>} : vector<8x16xf32>, vector<16x64xf32>, vector<8x64xf32> -> vector<8x64xf32>
    %c1_38 = arith.constant 1 : index
    %c0_39 = arith.constant 0 : index
    %c0_40 = arith.constant 0 : index
    %40 = vector.load %arg3[%c1_38, %c0_39, %c0_40] : memref<2x1x64xf32, #tpu.memory_space<vmem>>, vector<1x1x64xf32>
    %41 = vector.shape_cast %40 : vector<1x1x64xf32> to vector<1x64xf32>
    %42 = vector.broadcast %41 : vector<1x64xf32> to vector<8x64xf32>
    %43 = arith.addf %39, %42 : vector<8x64xf32>
    %cst_41 = arith.constant 1.000000e-01 : f32
    %44 = vector.broadcast %cst_41 : f32 to vector<8x64xf32>
    %45 = arith.mulf %44, %43 : vector<8x64xf32>
    %46 = arith.maximumf %43, %45 : vector<8x64xf32>
    %c1_42 = arith.constant 1 : index
    %c0_43 = arith.constant 0 : index
    %c0_44 = arith.constant 0 : index
    %c0_45 = arith.constant 0 : index
    %47 = vector.load %arg4[%c1_42, %c0_43, %c0_44, %c0_45] : memref<2x1x64x64xf32, #tpu.memory_space<vmem>>, vector<1x1x64x64xf32>
    %48 = vector.shape_cast %47 : vector<1x1x64x64xf32> to vector<64x64xf32>
    %cst_46 = arith.constant dense<0.000000e+00> : vector<8x64xf32>
    %49 = tpu.matmul %46, %48, %cst_46 {dimension_numbers = #tpu.dot_dimension_numbers<[1], [0], [0], [1], [0, 0, 1, 1], [], []>} : vector<8x64xf32>, vector<64x64xf32>, vector<8x64xf32> -> vector<8x64xf32>
    %c1_47 = arith.constant 1 : index
    %c0_48 = arith.constant 0 : index
    %c0_49 = arith.constant 0 : index
    %c0_50 = arith.constant 0 : index
    %50 = vector.load %arg5[%c1_47, %c0_48, %c0_49, %c0_50] : memref<2x1x1x64xf32, #tpu.memory_space<vmem>>, vector<1x1x1x64xf32>
    %51 = vector.shape_cast %50 : vector<1x1x1x64xf32> to vector<1x64xf32>
    %52 = vector.broadcast %51 : vector<1x64xf32> to vector<8x64xf32>
    %53 = arith.addf %49, %52 : vector<8x64xf32>
    %cst_51 = arith.constant 1.000000e-01 : f32
    %54 = vector.broadcast %cst_51 : f32 to vector<8x64xf32>
    %55 = arith.mulf %54, %53 : vector<8x64xf32>
    %56 = arith.maximumf %53, %55 : vector<8x64xf32>
    %c1_52 = arith.constant 1 : index
    %c0_53 = arith.constant 0 : index
    %c0_54 = arith.constant 0 : index
    %57 = vector.load %arg6[%c1_52, %c0_53, %c0_54] : memref<2x1x64xf32, #tpu.memory_space<vmem>>, vector<1x1x64xf32>
    %58 = vector.shape_cast %57 : vector<1x1x64xf32> to vector<1x64xf32>
    %59 = vector.broadcast %58 : vector<1x64xf32> to vector<8x64xf32>
    %60 = arith.mulf %56, %59 : vector<8x64xf32>
    %cst_55 = arith.constant dense<0.000000e+00> : vector<8xf32>
    %61 = vector.multi_reduction <add>, %60, %cst_55 [1] : vector<8x64xf32> to vector<8xf32>
    %62 = vector.shape_cast %61 : vector<8xf32> to vector<8x1xf32>
    %c1_56 = arith.constant 1 : index
    %c0_57 = arith.constant 0 : index
    %c0_58 = arith.constant 0 : index
    %63 = vector.load %arg7[%c1_56, %c0_57, %c0_58] : memref<2x1x1xf32, #tpu.memory_space<vmem>>, vector<1x1x1xf32>
    %64 = vector.shape_cast %63 : vector<1x1x1xf32> to vector<1x1xf32>
    %65 = vector.broadcast %64 : vector<1x1xf32> to vector<8x1xf32>
    %66 = arith.addf %62, %65 : vector<8x1xf32>
    %c0_59 = arith.constant 0 : index
    %c1_60 = arith.constant 1 : index
    %67 = vector.load %arg9[%c0_59, %c1_60] : memref<8x16xf32, #tpu.memory_space<vmem>>, vector<8x1xf32>
    tpu.vector_store %arg9[%c0_59, %c1_60], %66 {strides = array<i32>} : memref<8x16xf32, #tpu.memory_space<vmem>>, vector<8x1xf32>,
    %c0_61 = arith.constant 0 : index
    %c0_62 = arith.constant 0 : index
    %68 = vector.load %arg9[%c0_61, %c0_62] : memref<8x16xf32, #tpu.memory_space<vmem>>, vector<8x2xf32>
    %c0_63 = arith.constant 0 : index
    %c0_64 = arith.constant 0 : index
    %69 = vector.load %arg8[%c0_63, %c0_64] : memref<8x2xf32, #tpu.memory_space<vmem>>, vector<8x2xf32>
    tpu.vector_store %arg8[%c0_63, %c0_64], %68 {strides = array<i32>} : memref<8x2xf32, #tpu.memory_space<vmem>>, vector<8x2xf32>,
    return
  }
  func.func @transform_0(%arg0: i32) -> (i32, i32) {
    %c0_i32 = arith.constant 0 : i32
    %c0_i32_0 = arith.constant 0 : i32
    return %arg0, %c0_i32 : i32, i32
  }
  func.func @transform_1(%arg0: i32) -> (i32, i32, i32) {
    %c0_i32 = arith.constant 0 : i32
    %c0_i32_0 = arith.constant 0 : i32
    %c0_i32_1 = arith.constant 0 : i32
    %c0_i32_2 = arith.constant 0 : i32
    return %c0_i32, %c0_i32_0, %c0_i32_1 : i32, i32, i32
  }
  func.func @transform_2(%arg0: i32) -> (i32, i32, i32) {
    %c0_i32 = arith.constant 0 : i32
    %c0_i32_0 = arith.constant 0 : i32
    %c0_i32_1 = arith.constant 0 : i32
    %c0_i32_2 = arith.constant 0 : i32
    return %c0_i32, %c0_i32_0, %c0_i32_1 : i32, i32, i32
  }
  func.func @transform_3(%arg0: i32) -> (i32, i32, i32, i32) {
    %c0_i32 = arith.constant 0 : i32
    %c0_i32_0 = arith.constant 0 : i32
    %c0_i32_1 = arith.constant 0 : i32
    %c0_i32_2 = arith.constant 0 : i32
    %c0_i32_3 = arith.constant 0 : i32
    return %c0_i32, %c0_i32_0, %c0_i32_1, %c0_i32_2 : i32, i32, i32, i32
  }
  func.func @transform_4(%arg0: i32) -> (i32, i32, i32, i32) {
    %c0_i32 = arith.constant 0 : i32
    %c0_i32_0 = arith.constant 0 : i32
    %c0_i32_1 = arith.constant 0 : i32
    %c0_i32_2 = arith.constant 0 : i32
    %c0_i32_3 = arith.constant 0 : i32
    return %c0_i32, %c0_i32_0, %c0_i32_1, %c0_i32_2 : i32, i32, i32, i32
  }
  func.func @transform_5(%arg0: i32) -> (i32, i32, i32) {
    %c0_i32 = arith.constant 0 : i32
    %c0_i32_0 = arith.constant 0 : i32
    %c0_i32_1 = arith.constant 0 : i32
    %c0_i32_2 = arith.constant 0 : i32
    return %c0_i32, %c0_i32_0, %c0_i32_1 : i32, i32, i32
  }
  func.func @transform_6(%arg0: i32) -> (i32, i32, i32) {
    %c0_i32 = arith.constant 0 : i32
    %c0_i32_0 = arith.constant 0 : i32
    %c0_i32_1 = arith.constant 0 : i32
    %c0_i32_2 = arith.constant 0 : i32
    return %c0_i32, %c0_i32_0, %c0_i32_1 : i32, i32, i32
  }
  func.func @transform_7(%arg0: i32) -> (i32, i32) {
    %c0_i32 = arith.constant 0 : i32
    %c0_i32_0 = arith.constant 0 : i32
    return %arg0, %c0_i32 : i32, i32
  }
}

</mosaic_0001>

<bundles_post_ra>
// kernel: tpu_custom_call.1
= control target key start
LH: loop header
LB: loop body
LE: loop exit
PB: predicated region body
PF: predicated region fallthrough
CT: control target
= control target key end

     0   :  { %12 = vsyncpa [#allocation4], 0  ;;  %s1236_s0 = inlined_call_operand.vmem [shape: f32[16,8], index: 0, kind: input, shape index: {}]   ;;  %s1237_s1 = inlined_call_operand.hbm [shape: f32[2,16,64], index: 1, kind: input, shape index: {}]   ;;  %s1238_s2 = inlined_call_operand.vmem [shape: f32[2,1,64], index: 2, kind: input, shape index: {}]   ;;  %s1239_s3 = inlined_call_operand.hbm [shape: f32[2,1,64,64], index: 3, kind: input, shape index: {}]   ;;  %s1240_s4 = inlined_call_operand.vmem [shape: f32[2,1,1,64], index: 4, kind: input, shape index: {}]   ;;  %s1241_s5 = inlined_call_operand.vmem [shape: f32[2,1,64], index: 5, kind: input, shape index: {}]   ;;  %s1242_s6 = inlined_call_operand.vmem [shape: f32[2,1,1], index: 6, kind: input, shape index: {}]   ;;  %s1243_s7 = inlined_call_operand.vmem [shape: f32[16,2], index: 7, kind: output, shape index: {}]  }
   0x1   :  { %13 = vsyncpa [#allocation6], 0  ;;  %s1087_s24 = smov 0  }
   0x2 LB: > { %s1093_s25 = sadd.s32 4294967295, %s1036_s24   ;;  %p797_p0 = scmp.ge.s32.totalorder %s1036_s24, 1  ;;  %s1036_s24 = sphi %s1087_s24, %s19_s24  }
   0x3   : > { %p202_p1 = scmp.lt.s32.totalorder %s1036_s24, 3  ;;  %s1038_s26 = smov [#allocation3]  }
   0x4   : > { %s214_s27 = sshll.u32 %s1038_s26, 4  ;;  %p1244_p3 = scmp.eq.s32.totalorder %s1093_s25, 0  ;;  %s215_s27 = int_to_ptr.vmem [resolvable:$true] %s214_s27 }
   0x5   : > { %p1097_p2 = pnand %p797_p0, %p202_p1  ;;  %s1039_s29 = smov [#allocation5]  }
   0x6   : > { %s230_s30 = sshll.u32 %s1039_s29, 4  ;;  %s966_s11 = scalar_lea.hbm %s1237_s1, 512  ;;  %s1110_s30 = int_to_ptr.vmem [resolvable:$true] %s230_s30 }
   0x7   : > { %s1246_s28 = scalar_select %p1097_p2, 1, 0 }
   0x8   : > { %p938_p4 = pneg %p1097_p2  ;;  %p967_p6 = scmp.ne.s32.totalorder %s1237_s1, %s966_s11 }
   0x9   : > { %p973_p10 = scmp.lt.u32.totalorder %s966_s11, %s1237_s1 }
   0xa   : > { %p1106_p5 = pnand %p1244_p3, %p938_p4 }
   0xc   : > { %p968_p7 = pneg %p1106_p5 }
   0xe   : > { %p969_p8 = pnand %p968_p7, %p967_p6 }
  0x10   : > { %p970_p9 = pneg %p969_p8 }
  0x12   : > { %p975_p11 = pnand %p973_p10, %p970_p9 }
  0x14   : > { %978 = shalt.err (!%p975_p11)
}
  0x15   : > { %s979_s16 = scalar_lea.vmem %s215_s27, 512  ;;  %p987_p1 = scmp.lt.s32.totalorder %s215_s27, %s215_s27 }
  0x16   : > { %p980_p12 = scmp.ne.s32.totalorder %s215_s27, %s979_s16  ;;  %p988_p4 = scmp.lt.s32.totalorder %s979_s16, %s979_s16 }
  0x18   : > { %p982_p13 = pnand %p980_p12, %p968_p7  ;;  %p989_p3 = por %p988_p4, %p987_p1 }
  0x1a   : > { %p983_p0 = pneg %p982_p13 }
  0x1c   : > { %p990_p2 = pnand %p989_p3, %p983_p0 }
  0x1e   : > { %993 = shalt.err (!%p990_p2)
}
  0x1f   : > { %s1040_s17 = smov 128   ;;  %s1041_s18 = smov 8  }
  0x20   : > { %941 = dma.hbm_to_vmem [thread:$0]  (!%p1106_p5), %s1237_s1, 512, %s215_s27, [#allocation4], %s1040_s17, %s1040_s17, %s1041_s18  }
  0x21   : > { %s994_s23 = scalar_lea.hbm %s1239_s3, 2048 }
  0x22   : > { %p995_p6 = scmp.ne.s32.totalorder %s1239_s3, %s994_s23  ;;  %p1001_p8 = scmp.lt.u32.totalorder %s994_s23, %s1239_s3 }
  0x24   : > { %p997_p2 = pnand %p995_p6, %p968_p7 }
  0x26   : > { %p998_p3 = pneg %p997_p2 }
  0x28   : > { %p1003_p9 = pnand %p1001_p8, %p998_p3 }
  0x2a   : > { %1006 = shalt.err (!%p1003_p9)
}
  0x2b   : > { %s1007_s27 = scalar_lea.vmem %s1110_s30, 2048  ;;  %p1015_p13 = scmp.lt.s32.totalorder %s1110_s30, %s1110_s30 }
  0x2c   : > { %p1008_p10 = scmp.ne.s32.totalorder %s1110_s30, %s1007_s27  ;;  %p1016_p0 = scmp.lt.s32.totalorder %s1007_s27, %s1007_s27 }
  0x2e   : > { %p1010_p11 = pnand %p1008_p10, %p968_p7  ;;  %p1017_p1 = por %p1016_p0, %p1015_p13 }
  0x30   : > { %p1011_p12 = pneg %p1010_p11 }
  0x32   : > { %p1018_p4 = pnand %p1017_p1, %p1011_p12 }
  0x34   : > { %1021 = shalt.err (!%p1018_p4)
}
  0x35   : > { %944 = dma.hbm_to_vmem [thread:$0]  (!%p1106_p5), %s1239_s3, 2048, %s1110_s30, [#allocation6], %s1040_s17, %s1040_s17, %s1041_s18  }
  0x36   : > { %p1248_p6 = scmp.ne.s32.totalorder %s1246_s28, 0 }
  0x37   : > { %p1249_p2 = scmp.eq.s32.totalorder (!%p1248_p6), %s1093_s25, 0 }
  0x38   : > { %262 = sbr.rel (%p1248_p6) target bundleno = 1494 (0x5d6), region = 48 }
  0x3f   : > { %1027 = dma.done.wait (%p1249_p2), [#allocation4], 512   ;;  %p1250_p7 = pmov %p1249_p2 }
  0x40   : > { %p1251_p3 = pmov %p1249_p2 }
  0x41   : > { %1029 = vsyncadd (%p1250_p7), [#allocation4], 4294966784 }
  0x42   : > { %1031 = dma.done.wait (%p1251_p3), [#allocation6], 2048   ;;  %p1252_p8 = pmov %p1249_p2 }
  0x43   : > { %p296_p9 = scmp.lt.s32.totalorder %s1093_s25, 1  ;;  %vm304_vm0 = vcmask 64512   ;;  %v1042_v0 = vmov 0.0   ;;  %v1043_v1 = vmov 0.0|0.0   ;;  %vm1044_vm1 = vmmov 0   ;;  %v314_v3 = vld [vmem:[#allocation3] sm:$0xff] }
  0x44   : > { %1033 = vsyncadd (%p1252_p8), [#allocation6], 4294965248  ;;  %305 = vst.msk [vmem:[#allocation2] sm:$0xff] %vm304_vm0, %v1042_v0  ;;  %900 = vmatprep.subr.bf16.mxu1 %v1043_v1  ;;  %852 = vmatprep.mubr.msk.f32.mxu1 %vm1044_vm1, %v1042_v0  ;;  %v315_v4 = vld [vmem:[#allocation3 + $0x8] sm:$0xff]  ;;  %s1045_s14 = smov 8   ;;  %vm311_vm2 = vcmask 130112  }
  0x45   : > { %s1254_s25 = smov (!%p296_p9, %s1093_s25), 1  ;;  %915 = vmatprep.subr.bf16.mxu0 %v1043_v1  ;;  %878 = vmatprep.mubr.msk.f32.mxu0 %vm1044_vm1, %v1042_v0  ;;  %v901_v5 = vpack.c.bf16 %v315_v4, %v314_v3  ;;  %v399_v7 = vld [vmem:[#allocation5] sm:$0xff]  ;;  %v400_v8 = vld [vmem:[#allocation5 + $0x8] sm:$0xff]  ;;  %vm323_vm3 = vcmask 130048   ;;  %v401_v10 = vld [vmem:[#allocation5 + $0x10] sm:$0xff]  ;;  %vm414_vm4 = vcmask 523264  }
  0x46   : > { %s804_s28 = sshll.u32 %s1254_s25, 3  ;;  %v904_v9 = vpack.c.bf16 %v400_v8, %v399_v7  ;;  %v402_v11 = vld [vmem:[#allocation5 + $0x18] sm:$0xff]  ;;  %v403_v14 = vld [vmem:[#allocation5 + $0x20] sm:$0xff]  ;;  %v404_v15 = vld [vmem:[#allocation5 + $0x28] sm:$0xff]  ;;  %vm509_vm5 = vcmask 7168   ;;  %s1046_s30 = smov 1  }
  0x47   : > { %s299_s13 = scalar_lea.vmem %s1236_s0, %s804_s28  ;;  %902 = vmatpush3.bf16.msra.mxu1 %v901_v5  ;;  %v907_v13 = vpack.c.bf16 %v402_v11, %v401_v10  ;;  %v910_v16 = vpack.c.bf16 %v404_v15, %v403_v14  ;;  %v405_v17 = vld [vmem:[#allocation5 + $0x30] sm:$0xff]  ;;  %v406_v18 = vld [vmem:[#allocation5 + $0x38] sm:$0xff]  ;;  %v599_v41 = vld [vmem:[#allocation5 + $0x40] sm:$0xff]  ;;  %vm715_vm6 = vcmask 15368   ;;  %vm718_vm7 = vcmask 15360  }
  0x48   : > { %v306_v2 = vld [vmem:[%s299_s13] sm:$0xff]  ;;  %903 = vmatprep.subr.bf16.mxu1 %v1043_v1  ;;  %v913_v19 = vpack.c.bf16 %v406_v18, %v405_v17  ;;  %v513_v35 = vld [vmem:[#allocation3 + $0x10] sm:$0xff]  ;;  %v600_v42 = vld [vmem:[#allocation5 + $0x48] sm:$0xff] }
  0x49   : > { %308 = vrot.lane.b32.xlu0 %v306_v2, %s1045_s14  ;;  %v806_v20 = vld [vmem:[%s1238_s2] ss:$0 sm:$0xff]  ;;  %v919_v43 = vpack.c.bf16 %v600_v42, %v599_v41  ;;  %v601_v44 = vld [vmem:[#allocation5 + $0x50] sm:$0xff]  ;;  %v603_v48 = vld [vmem:[#allocation5 + $0x60] sm:$0xff]  ;;  %s303_s14 = scalar_lea.vmem %s1243_s7, %s804_s28 }
  0x4a   : > { %v808_v26 = vld [vmem:[%s1240_s4] ss:$0 sm:$0xff]  ;;  %v604_v49 = vld [vmem:[#allocation5 + $0x68] sm:$0xff]  ;;  %v605_v51 = vld [vmem:[#allocation5 + $0x70] sm:$0xff] }
  0x4b   : > { %v810_v31 = vld [vmem:[%s1241_s5] ss:$0 sm:$0xff]  ;;  %v925_v50 = vpack.c.bf16 %v604_v49, %v603_v48  ;;  %v813_v54 = vld [vmem:[%s1238_s2 + $0x1] ss:$0 sm:$0xff] }
  0x4c   : > { %v514_v36 = vld [vmem:[#allocation3 + $0x18] sm:$0xff] }
  0x4d   : > { %v916_v37 = vpack.c.bf16 %v514_v36, %v513_v35  ;;  %v811_v38 = vld [vmem:[%s1242_s6] ss:$0 sm:$0xff]  ;;  %v816_v60 = vld [vmem:[%s1240_s4 + $0x1] ss:$0 sm:$0xff] }
  0x4e   : > { %v602_v45 = vld [vmem:[#allocation5 + $0x58] sm:$0xff] }
  0x4f   : > { %917 = vmatpush3.bf16.msra.mxu0 %v916_v37  ;;  %v922_v47 = vpack.c.bf16 %v602_v45, %v601_v44  ;;  %v606_v52 = vld [vmem:[#allocation5 + $0x78] sm:$0xff] }
  0x50   : > { %918 = vmatprep.subr.bf16.mxu0 %v1043_v1  ;;  %v928_v53 = vpack.c.bf16 %v606_v52, %v605_v51  ;;  %v821_v5 = vld [vmem:[%s1242_s6 + $0x1] ss:$0 sm:$0xff] }
  0xbb   : > { %v309_v6 = vpop.permute.xlu0 %308 }
  0xbc   : > { %312 = vst.msk [vmem:[#allocation2] sm:$0xff] %vm311_vm2, %v309_v6 }
  0xc3   : > { %v313_v12 = vld [vmem:[#allocation2] sm:$0xff] }
  0xc4   : > { %853 = vmatmul.mubr.msk.f32.vlgmr.msra.gmra.mrb[0].mxu1 %vm323_vm3, %v313_v12 }
  0xc5   : > { %905 = vmatpush3.bf16.msra.mxu1 %v904_v9  ;;  %871 = vmatprep.mubr.msk.f32.mxu1 %vm1044_vm1, %v1042_v0 }
  0xc6   : > { %906 = vmatprep.subr.bf16.mxu1 %v1043_v1 }
  0xc9   : > { %908 = vmatpush3.bf16.msra.mxu1 %v907_v13 }
  0xca   : > { %909 = vmatprep.subr.bf16.mxu1 %v1043_v1 }
  0xcd   : > { %911 = vmatpush3.bf16.msra.mxu1 %v910_v16 }
  0xce   : > { %912 = vmatprep.subr.bf16.mxu1 %v1043_v1 }
  0xd1   : > { %914 = vmatpush3.bf16.msra.mxu1 %v913_v19 }
 0x197   : > { %v393_v21 = vpop.f32.mrb[0].mxu1 }
 0x198   : > { %v394_v22 = vadd.f32 %v806_v20, %v393_v21  ;;  %v854_v23 = vpop.f32.mrb[1].mxu1 }
 0x19a   : > { %v397_v24 = vmul.f32 0.1, %v394_v22 }
 0x19c   : > { %v398_v25 = vmax.f32 %v394_v22, %v397_v24 }
 0x19e   : > { %872 = vmatmul.mubr.msk.f32.vlgmr.msra.gmra.mrb[2].mxu1 %vm414_vm4, %v398_v25 }
 0x271   : > { %v484_v27 = vpop.f32.mrb[2].mxu1 }
 0x272   : > { %v485_v28 = vadd.f32 %v808_v26, %v484_v27  ;;  %v873_v29 = vpop.f32.mrb[3].mxu1 }
 0x274   : > { %v488_v30 = vmul.f32 0.1, %v485_v28 }
 0x276   : > { %v489_v32 = vmax.f32 %v485_v28, %v488_v30 }
 0x278   : > { %v497_v33 = vmul.f32 %v810_v31, %v489_v32 }
 0x27a   : > { %v498_v34 = vsel %vm414_vm4, %v497_v33, 0.0 }
 0x27b   : > { %499 = vadd.xlane.f32.xlu0 %v498_v34 }
 0x308   : > { %v500_v39 = vpop.xlane.xlu0 %499 }
 0x309   : > { %v508_v40 = vadd.f32 %v811_v38, %v500_v39 }
 0x30b   : > { %510 = vst.msk [vmem:[#allocation2] sm:$0xff] %vm509_vm5, %v508_v40 }
 0x312   : > { %v511_v46 = vld [vmem:[#allocation2] sm:$0xff] }
 0x313   : > { %879 = vmatmul.mubr.msk.f32.vlgmr.msra.gmra.mrb[0].mxu0 %vm323_vm3, %v511_v46 }
 0x314   : > { %920 = vmatpush3.bf16.msra.mxu0 %v919_v43  ;;  %897 = vmatprep.mubr.msk.f32.mxu0 %vm1044_vm1, %v1042_v0 }
 0x315   : > { %921 = vmatprep.subr.bf16.mxu0 %v1043_v1 }
 0x318   : > { %923 = vmatpush3.bf16.msra.mxu0 %v922_v47 }
 0x319   : > { %924 = vmatprep.subr.bf16.mxu0 %v1043_v1 }
 0x31c   : > { %926 = vmatpush3.bf16.msra.mxu0 %v925_v50 }
 0x31d   : > { %927 = vmatprep.subr.bf16.mxu0 %v1043_v1  ;;  %v819_v1 = vld [vmem:[%s1241_s5 + $0x1] ss:$0 sm:$0xff] }
 0x320   : > { %929 = vmatpush3.bf16.msra.mxu0 %v928_v53 }
 0x3e6   : > { %v592_v55 = vpop.f32.mrb[0].mxu0 }
 0x3e7   : > { %v593_v56 = vadd.f32 %v813_v54, %v592_v55  ;;  %v880_v57 = vpop.f32.mrb[1].mxu0 }
 0x3e9   : > { %v596_v58 = vmul.f32 0.1, %v593_v56 }
 0x3eb   : > { %v597_v59 = vmax.f32 %v593_v56, %v596_v58 }
 0x3ed   : > { %898 = vmatmul.mubr.msk.f32.vlgmr.msra.gmra.mrb[2].mxu0 %vm414_vm4, %v597_v59 }
 0x4c0   : > { %v684_v61 = vpop.f32.mrb[2].mxu0 }
 0x4c1   : > { %v685_v62 = vadd.f32 %v816_v60, %v684_v61  ;;  %v899_v63 = vpop.f32.mrb[3].mxu0 }
 0x4c3   : > { %v688_v0 = vmul.f32 0.1, %v685_v62 }
 0x4c5   : > { %v689_v2 = vmax.f32 %v685_v62, %v688_v0 }
 0x4c7   : > { %v698_v3 = vmul.f32 %v819_v1, %v689_v2 }
 0x4c9   : > { %v699_v4 = vsel %vm414_vm4, %v698_v3, 0.0 }
 0x4ca   : > { %700 = vadd.xlane.f32.xlu1 %v699_v4 }
 0x557   : > { %v701_v6 = vpop.xlane.xlu1 %700 }
 0x558   : > { %v710_v7 = vadd.f32 %v821_v5, %v701_v6 }
 0x55a   : > { %712 = vrot.lane.b32.xlu1 %v710_v7, %s1046_s30 }
 0x5cc   : > { %v713_v8 = vpop.permute.xlu1 %712 }
 0x5cd   : > { %716 = vst.msk [vmem:[#allocation2] sm:$0xff] %vm715_vm6, %v713_v8 }
 0x5d4   : > { %v717_v9 = vld [vmem:[#allocation2] sm:$0xff] }
 0x5d5   : > { %719 = vst.msk [vmem:[%s303_s14] sm:$0xff] %vm718_vm7, %v717_v9 }
 0x5d6 PF: > { %s19_s24 = sadd.s32 1, %s1036_s24  }
 0x5d7   : > { %p16_p5 = scmp.ge.s32.totalorder %s19_s24, 4  }
 0x5d9   :  { %18 = sbr.rel (!%p16_p5) target bundleno = 2 (0x2), region = 93 }
 0x5e0   :  { %739 = vsyncpa [#allocation4], 1 }
 0x5e1   :  { %741 = vsyncpa [#allocation4 + $0x1], 1 }
 0x5e2   :  { %742 = vsyncpa [#allocation6], 1 }

// kernel: tpu_custom_call.1
= control target key start
LH: loop header
LB: loop body
LE: loop exit
PB: predicated region body
PF: predicated region fallthrough
CT: control target
= control target key end

     0   :  { %12 = vsyncpa [#allocation4], 0  ;;  %s1236_s0 = inlined_call_operand.vmem [shape: f32[16,8], index: 0, kind: input, shape index: {}]   ;;  %s1237_s1 = inlined_call_operand.hbm [shape: f32[2,16,64], index: 1, kind: input, shape index: {}]   ;;  %s1238_s2 = inlined_call_operand.vmem [shape: f32[2,1,64], index: 2, kind: input, shape index: {}]   ;;  %s1239_s3 = inlined_call_operand.hbm [shape: f32[2,1,64,64], index: 3, kind: input, shape index: {}]   ;;  %s1240_s4 = inlined_call_operand.vmem [shape: f32[2,1,1,64], index: 4, kind: input, shape index: {}]   ;;  %s1241_s5 = inlined_call_operand.vmem [shape: f32[2,1,64], index: 5, kind: input, shape index: {}]   ;;  %s1242_s6 = inlined_call_operand.vmem [shape: f32[2,1,1], index: 6, kind: input, shape index: {}]   ;;  %s1243_s7 = inlined_call_operand.vmem [shape: f32[16,2], index: 7, kind: output, shape index: {}]  }
   0x1   :  { %13 = vsyncpa [#allocation6], 0  ;;  %s1087_s24 = smov 0  }
   0x2 LB: > { %s1093_s25 = sadd.s32 4294967295, %s1036_s24   ;;  %p797_p0 = scmp.ge.s32.totalorder %s1036_s24, 1  ;;  %s1036_s24 = sphi %s1087_s24, %s19_s24  }
   0x3   : > { %p202_p1 = scmp.lt.s32.totalorder %s1036_s24, 3  ;;  %s1038_s26 = smov [#allocation3]  }
   0x4   : > { %s214_s27 = sshll.u32 %s1038_s26, 4  ;;  %p1244_p3 = scmp.eq.s32.totalorder %s1093_s25, 0  ;;  %s215_s27 = int_to_ptr.vmem [resolvable:$true] %s214_s27 }
   0x5   : > { %p1097_p2 = pnand %p797_p0, %p202_p1  ;;  %s1039_s29 = smov [#allocation5]  }
   0x6   : > { %s230_s30 = sshll.u32 %s1039_s29, 4  ;;  %s966_s11 = scalar_lea.hbm %s1237_s1, 512  ;;  %s1110_s30 = int_to_ptr.vmem [resolvable:$true] %s230_s30 }
   0x7   : > { %s1246_s28 = scalar_select %p1097_p2, 1, 0 }
   0x8   : > { %p938_p4 = pneg %p1097_p2  ;;  %p967_p6 = scmp.ne.s32.totalorder %s1237_s1, %s966_s11 }
   0x9   : > { %p973_p10 = scmp.lt.u32.totalorder %s966_s11, %s1237_s1 }
   0xa   : > { %p1106_p5 = pnand %p1244_p3, %p938_p4 }
   0xc   : > { %p968_p7 = pneg %p1106_p5 }
   0xe   : > { %p969_p8 = pnand %p968_p7, %p967_p6 }
  0x10   : > { %p970_p9 = pneg %p969_p8 }
  0x12   : > { %p975_p11 = pnand %p973_p10, %p970_p9 }
  0x14   : > { %978 = shalt.err (!%p975_p11)
}
  0x15   : > { %s979_s16 = scalar_lea.vmem %s215_s27, 512  ;;  %p987_p1 = scmp.lt.s32.totalorder %s215_s27, %s215_s27 }
  0x16   : > { %p980_p12 = scmp.ne.s32.totalorder %s215_s27, %s979_s16  ;;  %p988_p4 = scmp.lt.s32.totalorder %s979_s16, %s979_s16 }
  0x18   : > { %p982_p13 = pnand %p980_p12, %p968_p7  ;;  %p989_p3 = por %p988_p4, %p987_p1 }
  0x1a   : > { %p983_p0 = pneg %p982_p13 }
  0x1c   : > { %p990_p2 = pnand %p989_p3, %p983_p0 }
  0x1e   : > { %993 = shalt.err (!%p990_p2)
}
  0x1f   : > { %s1040_s17 = smov 128   ;;  %s1041_s18 = smov 8  }
  0x20   : > { %941 = dma.hbm_to_vmem [thread:$0]  (!%p1106_p5), %s1237_s1, 512, %s215_s27, [#allocation4], %s1040_s17, %s1040_s17, %s1041_s18  }
  0x21   : > { %s994_s23 = scalar_lea.hbm %s1239_s3, 2048 }
  0x22   : > { %p995_p6 = scmp.ne.s32.totalorder %s1239_s3, %s994_s23  ;;  %p1001_p8 = scmp.lt.u32.totalorder %s994_s23, %s1239_s3 }
  0x24   : > { %p997_p2 = pnand %p995_p6, %p968_p7 }
  0x26   : > { %p998_p3 = pneg %p997_p2 }
  0x28   : > { %p1003_p9 = pnand %p1001_p8, %p998_p3 }
  0x2a   : > { %1006 = shalt.err (!%p1003_p9)
}
  0x2b   : > { %s1007_s27 = scalar_lea.vmem %s1110_s30, 2048  ;;  %p1015_p13 = scmp.lt.s32.totalorder %s1110_s30, %s1110_s30 }
  0x2c   : > { %p1008_p10 = scmp.ne.s32.totalorder %s1110_s30, %s1007_s27  ;;  %p1016_p0 = scmp.lt.s32.totalorder %s1007_s27, %s1007_s27 }
  0x2e   : > { %p1010_p11 = pnand %p1008_p10, %p968_p7  ;;  %p1017_p1 = por %p1016_p0, %p1015_p13 }
  0x30   : > { %p1011_p12 = pneg %p1010_p11 }
  0x32   : > { %p1018_p4 = pnand %p1017_p1, %p1011_p12 }
  0x34   : > { %1021 = shalt.err (!%p1018_p4)
}
  0x35   : > { %944 = dma.hbm_to_vmem [thread:$0]  (!%p1106_p5), %s1239_s3, 2048, %s1110_s30, [#allocation6], %s1040_s17, %s1040_s17, %s1041_s18  }
  0x36   : > { %p1248_p6 = scmp.ne.s32.totalorder %s1246_s28, 0 }
  0x37   : > { %p1249_p2 = scmp.eq.s32.totalorder (!%p1248_p6), %s1093_s25, 0 }
  0x38   : > { %262 = sbr.rel (%p1248_p6) target bundleno = 1494 (0x5d6), region = 48 }
  0x3f   : > { %1027 = dma.done.wait (%p1249_p2), [#allocation4], 512   ;;  %p1250_p7 = pmov %p1249_p2 }
  0x40   : > { %p1251_p3 = pmov %p1249_p2 }
  0x41   : > { %1029 = vsyncadd (%p1250_p7), [#allocation4], 4294966784 }
  0x42   : > { %1031 = dma.done.wait (%p1251_p3), [#allocation6], 2048   ;;  %p1252_p8 = pmov %p1249_p2 }
  0x43   : > { %p296_p9 = scmp.lt.s32.totalorder %s1093_s25, 1  ;;  %vm304_vm0 = vcmask 64512   ;;  %v1042_v0 = vmov 0.0   ;;  %v1043_v1 = vmov 0.0|0.0   ;;  %vm1044_vm1 = vmmov 0   ;;  %v314_v3 = vld [vmem:[#allocation3] sm:$0xff] }
  0x44   : > { %1033 = vsyncadd (%p1252_p8), [#allocation6], 4294965248  ;;  %305 = vst.msk [vmem:[#allocation2] sm:$0xff] %vm304_vm0, %v1042_v0  ;;  %900 = vmatprep.subr.bf16.mxu1 %v1043_v1  ;;  %852 = vmatprep.mubr.msk.f32.mxu1 %vm1044_vm1, %v1042_v0  ;;  %v315_v4 = vld [vmem:[#allocation3 + $0x8] sm:$0xff]  ;;  %s1045_s14 = smov 8   ;;  %vm311_vm2 = vcmask 130112  }
  0x45   : > { %s1254_s25 = smov (!%p296_p9, %s1093_s25), 1  ;;  %915 = vmatprep.subr.bf16.mxu0 %v1043_v1  ;;  %878 = vmatprep.mubr.msk.f32.mxu0 %vm1044_vm1, %v1042_v0  ;;  %v901_v5 = vpack.c.bf16 %v315_v4, %v314_v3  ;;  %v399_v7 = vld [vmem:[#allocation5] sm:$0xff]  ;;  %v400_v8 = vld [vmem:[#allocation5 + $0x8] sm:$0xff]  ;;  %vm323_vm3 = vcmask 130048   ;;  %v401_v10 = vld [vmem:[#allocation5 + $0x10] sm:$0xff]  ;;  %vm414_vm4 = vcmask 523264  }
  0x46   : > { %s804_s28 = sshll.u32 %s1254_s25, 3  ;;  %v904_v9 = vpack.c.bf16 %v400_v8, %v399_v7  ;;  %v402_v11 = vld [vmem:[#allocation5 + $0x18] sm:$0xff]  ;;  %v403_v14 = vld [vmem:[#allocation5 + $0x20] sm:$0xff]  ;;  %v404_v15 = vld [vmem:[#allocation5 + $0x28] sm:$0xff]  ;;  %vm509_vm5 = vcmask 7168   ;;  %s1046_s30 = smov 1  }
  0x47   : > { %s299_s13 = scalar_lea.vmem %s1236_s0, %s804_s28  ;;  %902 = vmatpush3.bf16.msra.mxu1 %v901_v5  ;;  %v907_v13 = vpack.c.bf16 %v402_v11, %v401_v10  ;;  %v910_v16 = vpack.c.bf16 %v404_v15, %v403_v14  ;;  %v405_v17 = vld [vmem:[#allocation5 + $0x30] sm:$0xff]  ;;  %v406_v18 = vld [vmem:[#allocation5 + $0x38] sm:$0xff]  ;;  %v599_v41 = vld [vmem:[#allocation5 + $0x40] sm:$0xff]  ;;  %vm715_vm6 = vcmask 15368   ;;  %vm718_vm7 = vcmask 15360  }
  0x48   : > { %v306_v2 = vld [vmem:[%s299_s13] sm:$0xff]  ;;  %903 = vmatprep.subr.bf16.mxu1 %v1043_v1  ;;  %v913_v19 = vpack.c.bf16 %v406_v18, %v405_v17  ;;  %v513_v35 = vld [vmem:[#allocation3 + $0x10] sm:$0xff]  ;;  %v600_v42 = vld [vmem:[#allocation5 + $0x48] sm:$0xff] }
  0x49   : > { %308 = vrot.lane.b32.xlu0 %v306_v2, %s1045_s14  ;;  %v806_v20 = vld [vmem:[%s1238_s2] ss:$0 sm:$0xff]  ;;  %v919_v43 = vpack.c.bf16 %v600_v42, %v599_v41  ;;  %v601_v44 = vld [vmem:[#allocation5 + $0x50] sm:$0xff]  ;;  %v603_v48 = vld [vmem:[#allocation5 + $0x60] sm:$0xff]  ;;  %s303_s14 = scalar_lea.vmem %s1243_s7, %s804_s28 }
  0x4a   : > { %v808_v26 = vld [vmem:[%s1240_s4] ss:$0 sm:$0xff]  ;;  %v604_v49 = vld [vmem:[#allocation5 + $0x68] sm:$0xff]  ;;  %v605_v51 = vld [vmem:[#allocation5 + $0x70] sm:$0xff] }
  0x4b   : > { %v810_v31 = vld [vmem:[%s1241_s5] ss:$0 sm:$0xff]  ;;  %v925_v50 = vpack.c.bf16 %v604_v49, %v603_v48  ;;  %v813_v54 = vld [vmem:[%s1238_s2 + $0x1] ss:$0 sm:$0xff] }
  0x4c   : > { %v514_v36 = vld [vmem:[#allocation3 + $0x18] sm:$0xff] }
  0x4d   : > { %v916_v37 = vpack.c.bf16 %v514_v36, %v513_v35  ;;  %v811_v38 = vld [vmem:[%s1242_s6] ss:$0 sm:$0xff]  ;;  %v816_v60 = vld [vmem:[%s1240_s4 + $0x1] ss:$0 sm:$0xff] }
  0x4e   : > { %v602_v45 = vld [vmem:[#allocation5 + $0x58] sm:$0xff] }
  0x4f   : > { %917 = vmatpush3.bf16.msra.mxu0 %v916_v37  ;;  %v922_v47 = vpack.c.bf16 %v602_v45, %v601_v44  ;;  %v606_v52 = vld [vmem:[#allocation5 + $0x78] sm:$0xff] }
  0x50   : > { %918 = vmatprep.subr.bf16.mxu0 %v1043_v1  ;;  %v928_v53 = vpack.c.bf16 %v606_v52, %v605_v51  ;;  %v821_v5 = vld [vmem:[%s1242_s6 + $0x1] ss:$0 sm:$0xff] }
  0xbb   : > { %v309_v6 = vpop.permute.xlu0 %308 }
  0xbc   : > { %312 = vst.msk [vmem:[#allocation2] sm:$0xff] %vm311_vm2, %v309_v6 }
  0xc3   : > { %v313_v12 = vld [vmem:[#allocation2] sm:$0xff] }
  0xc4   : > { %853 = vmatmul.mubr.msk.f32.vlgmr.msra.gmra.mrb[0].mxu1 %vm323_vm3, %v313_v12 }
  0xc5   : > { %905 = vmatpush3.bf16.msra.mxu1 %v904_v9  ;;  %871 = vmatprep.mubr.msk.f32.mxu1 %vm1044_vm1, %v1042_v0 }
  0xc6   : > { %906 = vmatprep.subr.bf16.mxu1 %v1043_v1 }
  0xc9   : > { %908 = vmatpush3.bf16.msra.mxu1 %v907_v13 }
  0xca   : > { %909 = vmatprep.subr.bf16.mxu1 %v1043_v1 }
  0xcd   : > { %911 = vmatpush3.bf16.msra.mxu1 %v910_v16 }
  0xce   : > { %912 = vmatprep.subr.bf16.mxu1 %v1043_v1 }
  0xd1   : > { %914 = vmatpush3.bf16.msra.mxu1 %v913_v19 }
 0x197   : > { %v393_v21 = vpop.f32.mrb[0].mxu1 }
 0x198   : > { %v394_v22 = vadd.f32 %v806_v20, %v393_v21  ;;  %v854_v23 = vpop.f32.mrb[1].mxu1 }
 0x19a   : > { %v397_v24 = vmul.f32 0.1, %v394_v22 }
 0x19c   : > { %v398_v25 = vmax.f32 %v394_v22, %v397_v24 }
 0x19e   : > { %872 = vmatmul.mubr.msk.f32.vlgmr.msra.gmra.mrb[2].mxu1 %vm414_vm4, %v398_v25 }
 0x271   : > { %v484_v27 = vpop.f32.mrb[2].mxu1 }
 0x272   : > { %v485_v28 = vadd.f32 %v808_v26, %v484_v27  ;;  %v873_v29 = vpop.f32.mrb[3].mxu1 }
 0x274   : > { %v488_v30 = vmul.f32 0.1, %v485_v28 }
 0x276   : > { %v489_v32 = vmax.f32 %v485_v28, %v488_v30 }
 0x278   : > { %v497_v33 = vmul.f32 %v810_v31, %v489_v32 }
 0x27a   : > { %v498_v34 = vsel %vm414_vm4, %v497_v33, 0.0 }
 0x27b   : > { %499 = vadd.xlane.f32.xlu0 %v498_v34 }
 0x308   : > { %v500_v39 = vpop.xlane.xlu0 %499 }
 0x309   : > { %v508_v40 = vadd.f32 %v811_v38, %v500_v39 }
 0x30b   : > { %510 = vst.msk [vmem:[#allocation2] sm:$0xff] %vm509_vm5, %v508_v40 }
 0x312   : > { %v511_v46 = vld [vmem:[#allocation2] sm:$0xff] }
 0x313   : > { %879 = vmatmul.mubr.msk.f32.vlgmr.msra.gmra.mrb[0].mxu0 %vm323_vm3, %v511_v46 }
 0x314   : > { %920 = vmatpush3.bf16.msra.mxu0 %v919_v43  ;;  %897 = vmatprep.mubr.msk.f32.mxu0 %vm1044_vm1, %v1042_v0 }
 0x315   : > { %921 = vmatprep.subr.bf16.mxu0 %v1043_v1 }
 0x318   : > { %923 = vmatpush3.bf16.msra.mxu0 %v922_v47 }
 0x319   : > { %924 = vmatprep.subr.bf16.mxu0 %v1043_v1 }
 0x31c   : > { %926 = vmatpush3.bf16.msra.mxu0 %v925_v50 }
 0x31d   : > { %927 = vmatprep.subr.bf16.mxu0 %v1043_v1  ;;  %v819_v1 = vld [vmem:[%s1241_s5 + $0x1] ss:$0 sm:$0xff] }
 0x320   : > { %929 = vmatpush3.bf16.msra.mxu0 %v928_v53 }
 0x3e6   : > { %v592_v55 = vpop.f32.mrb[0].mxu0 }
 0x3e7   : > { %v593_v56 = vadd.f32 %v813_v54, %v592_v55  ;;  %v880_v57 = vpop.f32.mrb[1].mxu0 }
 0x3e9   : > { %v596_v58 = vmul.f32 0.1, %v593_v56 }
 0x3eb   : > { %v597_v59 = vmax.f32 %v593_v56, %v596_v58 }
 0x3ed   : > { %898 = vmatmul.mubr.msk.f32.vlgmr.msra.gmra.mrb[2].mxu0 %vm414_vm4, %v597_v59 }
 0x4c0   : > { %v684_v61 = vpop.f32.mrb[2].mxu0 }
 0x4c1   : > { %v685_v62 = vadd.f32 %v816_v60, %v684_v61  ;;  %v899_v63 = vpop.f32.mrb[3].mxu0 }
 0x4c3   : > { %v688_v0 = vmul.f32 0.1, %v685_v62 }
 0x4c5   : > { %v689_v2 = vmax.f32 %v685_v62, %v688_v0 }
 0x4c7   : > { %v698_v3 = vmul.f32 %v819_v1, %v689_v2 }
 0x4c9   : > { %v699_v4 = vsel %vm414_vm4, %v698_v3, 0.0 }
 0x4ca   : > { %700 = vadd.xlane.f32.xlu1 %v699_v4 }
 0x557   : > { %v701_v6 = vpop.xlane.xlu1 %700 }
 0x558   : > { %v710_v7 = vadd.f32 %v821_v5, %v701_v6 }
 0x55a   : > { %712 = vrot.lane.b32.xlu1 %v710_v7, %s1046_s30 }
 0x5cc   : > { %v713_v8 = vpop.permute.xlu1 %712 }
 0x5cd   : > { %716 = vst.msk [vmem:[#allocation2] sm:$0xff] %vm715_vm6, %v713_v8 }
 0x5d4   : > { %v717_v9 = vld [vmem:[#allocation2] sm:$0xff] }
 0x5d5   : > { %719 = vst.msk [vmem:[%s303_s14] sm:$0xff] %vm718_vm7, %v717_v9 }
 0x5d6 PF: > { %s19_s24 = sadd.s32 1, %s1036_s24  }
 0x5d7   : > { %p16_p5 = scmp.ge.s32.totalorder %s19_s24, 4  }
 0x5d9   :  { %18 = sbr.rel (!%p16_p5) target bundleno = 2 (0x2), region = 93 }
 0x5e0   :  { %739 = vsyncpa [#allocation4], 1 }
 0x5e1   :  { %741 = vsyncpa [#allocation4 + $0x1], 1 }
 0x5e2   :  { %742 = vsyncpa [#allocation6], 1 }

</bundles_post_ra>
